<compile_context>
chip_gen: v5e
topology: v5e:2x2
jax: 0.10.0
libtpu: 0.0.40
codegen_flags: <defaults>
</compile_context>

<pallas_src>
import jax
import jax.numpy as jnp
from jax import lax
from jax.experimental import pallas as pl
from jax.experimental.pallas import tpu as pltpu


def _ceil_to(x, m):
    return (x + m - 1) // m * m


def _w2v_kernel(widx_ref, cidx_ref, table_ref, o_ref):
    # widx_ref : (TB*Wc, 1) int32   flattened word indices for this batch tile
    # cidx_ref : (TB*K, 1)  int32   flattened context (pos+neg) indices
    # table_ref: (V, D)     f32     full embedding table (resident in VMEM)
    # o_ref    : (TB, Wc, K) f32    sigmoid(wv @ cv^T) for this batch tile
    V, D = table_ref.shape
    TB, Wc, K = o_ref.shape
    table = table_ref[...]
    ftype = table.dtype

    # Lane-dense one-hots: vocab on the lane (last) axis, rows on sublanes.
    onehot_w = (lax.broadcasted_iota(jnp.int32, (TB * Wc, V), 1)
                == widx_ref[...]).astype(ftype)                  # (TB*Wc, V)
    onehot_c = (lax.broadcasted_iota(jnp.int32, (TB * K, V), 1)
                == cidx_ref[...]).astype(ftype)                  # (TB*K, V)

    # Embedding gathers as MXU matmuls (exact: 0/1 weights, f32 accumulate).
    wv = jnp.dot(onehot_w, table, preferred_element_type=jnp.float32)  # (TB*Wc, D)
    cv = jnp.dot(onehot_c, table, preferred_element_type=jnp.float32)  # (TB*K, D)

    # Score only the K context rows of each example: s[t,w,k] = <wv[t,w], cv[t,k]>.
    wv4 = wv.reshape(TB, Wc, 1, D)
    cv4 = cv.reshape(TB, 1, K, D)
    s = jnp.sum(wv4 * cv4, axis=-1)                                    # (TB, Wc, K)

    o_ref[...] = jax.nn.sigmoid(s).astype(o_ref.dtype)


def word2vec_forward(table, word_idx, context_idx, *, batch_tile=128):
    """Pallas forward: returns squeeze(sigmoid(bmm(wv, cv^T)))."""
    B, Wc = word_idx.shape
    B2, K = context_idx.shape
    assert B == B2, (B, B2)
    V, D = table.shape

    # Batch tile: as large as possible up to 128 (one MXU pass worth of rows).
    TB = min(batch_tile, B)
    Bp = _ceil_to(B, TB)
    if Bp != B:
        pad = Bp - B
        word_idx = jnp.pad(word_idx, ((0, pad), (0, 0)))
        context_idx = jnp.pad(context_idx, ((0, pad), (0, 0)))

    # Pre-flatten indices so the kernel never reshapes the index data.
    widx = word_idx.astype(jnp.int32).reshape(Bp * Wc, 1)
    cidx = context_idx.astype(jnp.int32).reshape(Bp * K, 1)

    # VMEM budget: table buffers + index/output blocks + in-kernel temporaries.
    lane = lambda n: _ceil_to(n, 128)
    sub = lambda n: _ceil_to(n, 8)
    est = (2 * V * lane(D) * 4                                  # table (2 bufs, fetched once)
           + 2 * (sub(TB * Wc) + sub(TB * K)) * 128 * 4         # index blocks
           + 2 * TB * sub(Wc) * lane(K) * 4                     # output blocks
           + (TB * Wc + TB * K) * (lane(V) + lane(D)) * 4       # one-hots + gathered rows
           + TB * Wc * sub(K) * lane(D) * 4)                    # score broadcast temp
    vmem_limit = int(min(max(est + (4 << 20), 32 << 20), 110 << 20))

    out = pl.pallas_call(
        _w2v_kernel,
        out_shape=jax.ShapeDtypeStruct((Bp, Wc, K), table.dtype),
        grid_spec=pltpu.PrefetchScalarGridSpec(
            num_scalar_prefetch=0,
            grid=(Bp // TB,),
            in_specs=[
                pl.BlockSpec((TB * Wc, 1), lambda b: (b, 0)),   # word indices
                pl.BlockSpec((TB * K, 1), lambda b: (b, 0)),    # context indices
                # Constant block index: the table is DMA'd once and reused
                # across all batch tiles (no re-fetch between grid steps).
                pl.BlockSpec((V, D), lambda b: (0, 0)),
            ],
            out_specs=pl.BlockSpec((TB, Wc, K), lambda b: (b, 0, 0)),
        ),
        compiler_params=pltpu.CompilerParams(
            dimension_semantics=("parallel",),
            vmem_limit_bytes=vmem_limit),
    )(widx, cidx, table)

    if Bp != B:
        out = out[:B]
    return jnp.squeeze(out)  # matches torch .squeeze()


def _reference_forward(table, word_idx, context_idx):
    wv = table[word_idx]                                   # (B, Wc, D)
    cv = table[context_idx]                                # (B, K, D)
    scores = jnp.einsum('bwd,bkd->bwk', wv, cv)            # (B, Wc, K)
    return jnp.squeeze(jax.nn.sigmoid(scores))


if __name__ == "__main__":
    vocab_size, emb_dim = 64, 128
    B, Wc, K = 4, 1, 8          # batch, center words per example, contexts (pos+neg)

    key = jax.random.PRNGKey(0)
    k_table, k_w, k_c = jax.random.split(key, 3)

    # nn.Embedding default init: N(0, 1)
    emb_table = jax.random.normal(k_table, (vocab_size, emb_dim), dtype=jnp.float32)
    word_idx = jax.random.randint(k_w, (B, Wc), 0, vocab_size, dtype=jnp.int32)
    context_idx = jax.random.randint(k_c, (B, K), 0, vocab_size, dtype=jnp.int32)

    out = word2vec_forward(emb_table, word_idx, context_idx)
    out = jax.block_until_ready(out)

    ref = _reference_forward(emb_table, word_idx, context_idx)
    assert out.shape == ref.shape, (out.shape, ref.shape)
    assert jnp.allclose(out, ref, atol=1e-5, rtol=1e-5), "mismatch vs reference"

    print("KERNEL_OK")
</pallas_src>

<mosaic_0001>
module attributes {stable_mosaic.version = 11 : i64} {
  func.func @_w2v_kernel(%arg0: i32, %arg1: memref<4x1xi32, #tpu.memory_space<vmem>>, %arg2: memref<32x1xi32, #tpu.memory_space<vmem>>, %arg3: memref<64x128xf32, #tpu.memory_space<vmem>>, %arg4: memref<4x1x8xf32, #tpu.memory_space<vmem>>) attributes {dimension_semantics = [#tpu.dimension_semantics<parallel>], iteration_bounds = array<i64: 1>, scalar_prefetch = 0 : i64, scratch_operands = 0 : i64, tpu.core_type = #tpu.core_type<tc>, window_params = [{transform_indices = @transform_0, window_bounds = array<i64: 4, 1>}, {transform_indices = @transform_1, window_bounds = array<i64: 32, 1>}, {pipeline_mode = #tpu.pipeline_mode<synchronous>, transform_indices = @transform_2, window_bounds = array<i64: 64, 128>}, {transform_indices = @transform_3, window_bounds = array<i64: 4, 1, 8>}]} {
    %c0 = arith.constant 0 : index
    %c0_0 = arith.constant 0 : index
    %0 = vector.load %arg3[%c0, %c0_0] : memref<64x128xf32, #tpu.memory_space<vmem>>, vector<64x128xf32>
    %1 = tpu.iota {dimensions = array<i32: 1>} : vector<4x64xi32>
    %c0_1 = arith.constant 0 : index
    %c0_2 = arith.constant 0 : index
    %2 = vector.load %arg1[%c0_1, %c0_2] : memref<4x1xi32, #tpu.memory_space<vmem>>, vector<4x1xi32>
    %3 = vector.broadcast %2 : vector<4x1xi32> to vector<4x64xi32>
    %4 = arith.cmpi eq, %1, %3 : vector<4x64xi32>
    %5 = arith.extui %4 : vector<4x64xi1> to vector<4x64xi32>
    %6 = arith.sitofp %5 : vector<4x64xi32> to vector<4x64xf32>
    %7 = tpu.iota {dimensions = array<i32: 1>} : vector<32x64xi32>
    %c0_3 = arith.constant 0 : index
    %c0_4 = arith.constant 0 : index
    %8 = vector.load %arg2[%c0_3, %c0_4] : memref<32x1xi32, #tpu.memory_space<vmem>>, vector<32x1xi32>
    %9 = vector.broadcast %8 : vector<32x1xi32> to vector<32x64xi32>
    %10 = arith.cmpi eq, %7, %9 : vector<32x64xi32>
    %11 = arith.extui %10 : vector<32x64xi1> to vector<32x64xi32>
    %12 = arith.sitofp %11 : vector<32x64xi32> to vector<32x64xf32>
    %cst = arith.constant dense<0.000000e+00> : vector<4x128xf32>
    %13 = tpu.matmul %6, %0, %cst {dimension_numbers = #tpu.dot_dimension_numbers<[1], [0], [0], [1], [0, 0, 1, 1], [], []>} : vector<4x64xf32>, vector<64x128xf32>, vector<4x128xf32> -> vector<4x128xf32>
    %cst_5 = arith.constant dense<0.000000e+00> : vector<32x128xf32>
    %14 = tpu.matmul %12, %0, %cst_5 {dimension_numbers = #tpu.dot_dimension_numbers<[1], [0], [0], [1], [0, 0, 1, 1], [], []>} : vector<32x64xf32>, vector<64x128xf32>, vector<32x128xf32> -> vector<32x128xf32>
    %15 = vector.shape_cast %13 : vector<4x128xf32> to vector<4x1x1x128xf32>
    %16 = vector.shape_cast %14 : vector<32x128xf32> to vector<4x1x8x128xf32>
    %17 = vector.broadcast %15 : vector<4x1x1x128xf32> to vector<4x1x8x128xf32>
    %18 = arith.mulf %17, %16 : vector<4x1x8x128xf32>
    %cst_6 = arith.constant dense<0.000000e+00> : vector<4x1x8xf32>
    %19 = vector.multi_reduction <add>, %18, %cst_6 [3] : vector<4x1x8x128xf32> to vector<4x1x8xf32>
    %20 = arith.negf %19 : vector<4x1x8xf32>
    %21 = math.exp %20 : vector<4x1x8xf32>
    %cst_7 = arith.constant 1.000000e+00 : f32
    %22 = vector.broadcast %cst_7 : f32 to vector<4x1x8xf32>
    %23 = arith.addf %22, %21 : vector<4x1x8xf32>
    %24 = arith.divf %22, %23 : vector<4x1x8xf32>
    %c0_8 = arith.constant 0 : index
    %c0_9 = arith.constant 0 : index
    %c0_10 = arith.constant 0 : index
    %25 = vector.load %arg4[%c0_8, %c0_9, %c0_10] : memref<4x1x8xf32, #tpu.memory_space<vmem>>, vector<4x1x8xf32>
    tpu.vector_store %arg4[%c0_8, %c0_9, %c0_10], %24 {strides = array<i32>} : memref<4x1x8xf32, #tpu.memory_space<vmem>>, vector<4x1x8xf32>,
    return
  }
  func.func @transform_0(%arg0: i32) -> (i32, i32) {
    %c0_i32 = arith.constant 0 : i32
    %c0_i32_0 = arith.constant 0 : i32
    return %arg0, %c0_i32 : i32, i32
  }
  func.func @transform_1(%arg0: i32) -> (i32, i32) {
    %c0_i32 = arith.constant 0 : i32
    %c0_i32_0 = arith.constant 0 : i32
    return %arg0, %c0_i32 : i32, i32
  }
  func.func @transform_2(%arg0: i32) -> (i32, i32) {
    %c0_i32 = arith.constant 0 : i32
    %c0_i32_0 = arith.constant 0 : i32
    %c0_i32_1 = arith.constant 0 : i32
    return %c0_i32, %c0_i32_0 : i32, i32
  }
  func.func @transform_3(%arg0: i32) -> (i32, i32, i32) {
    %c0_i32 = arith.constant 0 : i32
    %c0_i32_0 = arith.constant 0 : i32
    %c0_i32_1 = arith.constant 0 : i32
    return %arg0, %c0_i32, %c0_i32_0 : i32, i32, i32
  }
}

</mosaic_0001>

<bundles_post_ra>
// kernel: tpu_custom_call.1
= control target key start
LH: loop header
LB: loop body
LE: loop exit
PB: predicated region body
PF: predicated region fallthrough
CT: control target
= control target key end

     0   :  { %8 = vsyncpa [#allocation3], 0  ;;  %s471_s0 = inlined_call_operand.vmem [shape: s32[4,1], index: 0, kind: input, shape index: {}]   ;;  %s472_s1 = inlined_call_operand.vmem [shape: s32[32,1], index: 1, kind: input, shape index: {}]   ;;  %s473_s2 = inlined_call_operand.hbm [shape: f32[64,128], index: 2, kind: input, shape index: {}]   ;;  %s474_s3 = inlined_call_operand.hbm [shape: f32[4,1,8], index: 3, kind: output, shape index: {}]  }
   0x1   :  { %9 = vsyncpa [#allocation4], 0  ;;  %s18_s14 = sshll.u32 %s473_s2, 4  ;;  %s386_s15 = smov [#allocation2]   ;;  %s19_s14 = int_to_ptr.hbm [resolvable:$true] %s18_s14 }
   0x2   :  { %s20_s16 = sshll.u32 %s386_s15, 4  ;;  %s387_s17 = smov 128   ;;  %s21_s16 = int_to_ptr.vmem [resolvable:$true] %s20_s16 }
   0x3   :  { %s388_s18 = smov 8  }
   0x4   :  { %26 = dma.hbm_to_vmem [thread:$0]  %s19_s14, 1024, %s21_s16, [#allocation3], %s387_s17, %s387_s17, %s388_s18  }
   0x5   :  { %382 = dma.done.wait [#allocation3], 1024  }
   0x6   :  { %383 = vsyncadd [#allocation3], 4294966272  ;;  %v389_v0 = vmov 0   ;;  %v51_v1 = vld [vmem:[%s472_s1 + $0x18] sm:$0xff]  ;;  %v50_v2 = vld [vmem:[%s472_s1 + $0x10] sm:$0xff]  ;;  %v39_v14 = vlaneseq  ;;  %vm76_vm1 = vcmask 523264  }
   0x7   :  { %316 = vset.pattern.permute.xlu1 %v389_v0  ;;  %315 = vset.pattern.permute.xlu0 %v389_v0  ;;  %v48_v3 = vld [vmem:[%s472_s1] sm:$0xff]  ;;  %v38_v4 = vld [vmem:[#allocation2 + $0x38] sm:$0xff]  ;;  %v37_v5 = vld [vmem:[#allocation2 + $0x30] sm:$0xff]  ;;  %v390_v17 = vmov 0.0   ;;  %vm253_vm7 = vcmask 57344   ;;  %s264_s30 = sshll.u32 %s474_s3, 4  ;;  %s265_s30 = int_to_ptr.hbm [resolvable:$true] %s264_s30 }
   0x8   :  { %317 = vset.pattern.permute.xlu2 %v389_v0  ;;  %62 = vperm.xlu1 %316, %v51_v1   ;;  %v36_v6 = vld [vmem:[#allocation2 + $0x28] sm:$0xff]  ;;  %v35_v7 = vld [vmem:[#allocation2 + $0x20] sm:$0xff]  ;;  %v34_v10 = vld [vmem:[#allocation2 + $0x18] sm:$0xff]  ;;  %v432_v15 = vand.u32 127, %v39_v14  ;;  %s392_s4 = smov 16   ;;  %s393_s5 = smov 1  }
   0x9   :  { %59 = vperm.xlu0 %315, %v50_v2   ;;  %53 = vperm.xlu2 %317, %v48_v3   ;;  %v49_v8 = vld [vmem:[%s472_s1 + $0x8] sm:$0xff]  ;;  %v41_v9 = vld [vmem:[%s471_s0] sm:$0xf]  ;;  %v33_v11 = vld [vmem:[#allocation2 + $0x10] sm:$0xff]  ;;  %s391_s0 = smov [#allocation5]  }
   0xa   :  { %292 = vmatpush.msra.mxu3 %v38_v4  ;;  %88 = vmatpush.msra.mxu0 %v38_v4  ;;  %v32_v12 = vld [vmem:[#allocation2 + $0x8] sm:$0xff]  ;;  %v31_v13 = vld [vmem:[#allocation2] sm:$0xff]  ;;  %s262_s1 = sshll.u32 %s391_s0, 4  ;;  %s263_s1 = int_to_ptr.vmem [resolvable:$true] %s262_s1 }
   0xb   :  { %291 = vmatpush.msra.mxu2 %v38_v4  ;;  %120 = vmatpush.msra.mxu1 %v38_v4 }
   0xc   :  { %294 = vmatpush.msra.mxu3 %v37_v5  ;;  %89 = vmatpush.msra.mxu0 %v37_v5 }
   0xd   :  { %293 = vmatpush.msra.mxu2 %v37_v5  ;;  %121 = vmatpush.msra.mxu1 %v37_v5 }
   0xe   :  { %296 = vmatpush.msra.mxu3 %v36_v6  ;;  %90 = vmatpush.msra.mxu0 %v36_v6 }
   0xf   :  { %295 = vmatpush.msra.mxu2 %v36_v6  ;;  %122 = vmatpush.msra.mxu1 %v36_v6 }
  0x10   :  { %298 = vmatpush.msra.mxu3 %v35_v7  ;;  %43 = vperm.xlu1 %316, %v41_v9  }
  0x11   :  { %56 = vperm.xlu0 %315, %v49_v8   ;;  %91 = vmatpush.msra.mxu0 %v35_v7 }
  0x12   :  { %300 = vmatpush.msra.mxu3 %v34_v10  ;;  %297 = vmatpush.msra.mxu2 %v35_v7 }
  0x13   :  { %123 = vmatpush.msra.mxu1 %v35_v7  ;;  %92 = vmatpush.msra.mxu0 %v34_v10 }
  0x14   :  { %302 = vmatpush.msra.mxu3 %v33_v11  ;;  %299 = vmatpush.msra.mxu2 %v34_v10 }
  0x15   :  { %124 = vmatpush.msra.mxu1 %v34_v10  ;;  %93 = vmatpush.msra.mxu0 %v33_v11 }
  0x16   :  { %301 = vmatpush.msra.mxu2 %v33_v11  ;;  %304 = vmatpush.msra.mxu3 %v32_v12 }
  0x17   :  { %125 = vmatpush.msra.mxu1 %v33_v11  ;;  %94 = vmatpush.msra.mxu0 %v32_v12 }
  0x18   :  { %303 = vmatpush.msra.mxu2 %v32_v12  ;;  %306 = vmatpush.msra.mxu3 %v31_v13 }
  0x19   :  { %126 = vmatpush.msra.mxu1 %v32_v12  ;;  %95 = vmatpush.msra.mxu0 %v31_v13 }
  0x1a   :  { %305 = vmatpush.msra.mxu2 %v31_v13 }
  0x1b   :  { %127 = vmatpush.msra.mxu1 %v31_v13 }
  0x63   :  { %v54_v16 = vpop.permute.xlu2 %53 }
  0x64   :  { %vm64_vm0 = vcmp.eq.s32.totalorder %v432_v15, %v54_v16 }
  0x65   :  { %v278_v18 = vsel %vm64_vm0, 1.0, %v390_v17 }
  0x66   :  { %283 = vmatmul.msk.f32.vlgmr.msra.gmra.mxu1 %vm76_vm1, %v278_v18 }
  0x7a   :  { %v63_v19 = vpop.permute.xlu1 %62 }
  0x7b   :  { %v60_v20 = vpop.permute.xlu0 %59  ;;  %vm67_vm3 = vcmp.eq.s32.totalorder %v432_v15, %v63_v19 }
  0x7c   :  { %vm66_vm2 = vcmp.eq.s32.totalorder %v432_v15, %v60_v20  ;;  %v281_v26 = vsel %vm67_vm3, 1.0, %v390_v17 }
  0x7d   :  { %v280_v21 = vsel %vm66_vm2, 1.0, %v390_v17 }
  0x7e   :  { %285 = vmatmul.msk.f32.vlgmr.msra.gmra.mxu3 %vm76_vm1, %v280_v21 }
  0x82   :  { %v44_v23 = vpop.permute.xlu1 %43 }
  0x83   :  { %v57_v22 = vpop.permute.xlu0 %56  ;;  %vm45_vm5 = vcmp.eq.s32.totalorder %v432_v15, %v44_v23 }
  0x84   :  { %vm65_vm4 = vcmp.eq.s32.totalorder %v432_v15, %v57_v22  ;;  %v277_v25 = vsel %vm45_vm5, 1.0, %v390_v17 }
  0x85   :  { %v279_v24 = vsel %vm65_vm4, 1.0, %v390_v17  ;;  %282 = vmatmul.msk.f32.vlgmr.msra.gmra.mxu0 %vm76_vm1, %v277_v25 }
  0x86   :  { %284 = vmatmul.msk.f32.vlgmr.msra.gmra.mxu2 %vm76_vm1, %v279_v24  ;;  %286 = vmatmul.msk.f32.gmra.mxu3 %vm76_vm1, %v281_v26 }
  0xe3   :  { %v129_v29 = vpop.f32.mrf.mxu1 }
 0x101   :  { %v135_v27 = vpop.f32.mrf.mxu3 }
 0x102   :  { %v97_v28 = vpop.f32.mrf.mxu0 }
 0x103   :  { %v143_v30 = vrot.slane %v97_v28, 2  ;;  %v145_v31 = vperm.slane %v97_v28, 0  ;;  %v142_v32 = vrot.slane %v97_v28, 1  ;;  %v144_v36 = vrot.slane %v97_v28, 3 }
 0x105   :  { %v153_v33 = vmul.f32 %v145_v31, %v129_v29  ;;  %v147_v34 = vperm.slane %v143_v30, 0  ;;  %v146_v35 = vperm.slane %v142_v32, 0  ;;  %v148_v41 = vperm.slane %v144_v36, 0 }
 0x107   :  { %157 = vadd.xlane.f32.xlu2 %v153_v33  ;;  %v155_v37 = vmul.f32 %v147_v34, %v135_v27 }
 0x109   :  { %v132_v38 = vpop.f32.mrf.mxu2  ;;  %161 = vadd.xlane.f32.xlu1 %v155_v37  ;;  %v138_v40 = vpop.f32.mrf.mxu3 }
 0x10a   :  { %v154_v39 = vmul.f32 %v146_v35, %v132_v38  ;;  %v156_v42 = vmul.f32 %v148_v41, %v138_v40 }
 0x10c   :  { %159 = vadd.xlane.f32.xlu0 %v154_v39 }
 0x10f   :  { %163 = vadd.xlane.f32.xlu2 %v156_v42 }
 0x17a   :  { %v158_v43 = vpop.xlane.xlu2 %157 }
 0x17b   :  { %v287_v44 = vmul.f32 -1.442695, %v158_v43 }
 0x17c   :  { %v162_v45 = vpop.xlane.xlu1 %161 }
 0x17d   :  { %318 = vpow2.f32 %v287_v44  ;;  %v289_v46 = vmul.f32 -1.442695, %v162_v45 }
 0x17f   :  { %v160_v47 = vpop.xlane.xlu0 %159  ;;  %320 = vpow2.f32 %v289_v46 }
 0x180   :  { %v288_v48 = vmul.f32 -1.442695, %v160_v47 }
 0x182   :  { %322 = vpow2.f32 %v288_v48  ;;  %v164_v49 = vpop.xlane.xlu2 %163 }
 0x183   :  { %v319_v50 = vpop.eup %318  ;;  %v290_v51 = vmul.f32 -1.442695, %v164_v49 }
 0x184   :  { %v177_v52 = vadd.f32 1.0, %v319_v50 }
 0x185   :  { %v321_v53 = vpop.eup %320  ;;  %324 = vpow2.f32 %v290_v51 }
 0x186   :  { %326 = vrcp.f32 %v177_v52  ;;  %v179_v55 = vadd.f32 1.0, %v321_v53  ;;  %v190_v61 = vand.u32 2147483647, %v177_v52  ;;  %v192_v62 = vand.u32 2147483648, %v177_v52 }
 0x187   :  { %vm186_vm6 = vweird.f32 %v177_v52 }
 0x188   :  { %v323_v54 = vpop.eup %322  ;;  %328 = vrcp.f32 %v179_v55  ;;  %vm447_vm9 = vcmp.eq.f32.partialorder %v190_v61, 8.507059e+37  ;;  %v193_v6 = vor.u32 1.1754944e-38, %v192_v62  ;;  %v220_v8 = vand.u32 2147483647, %v179_v55 }
 0x189   :  { %v178_v56 = vadd.f32 1.0, %v323_v54  ;;  %v222_v9 = vand.u32 2147483648, %v179_v55  ;;  %vm216_vm10 = vweird.f32 %v179_v55 }
 0x18a   :  { %vm221_vm15 = vcmp.eq.f32.partialorder %v220_v8, 8.507059e+37 }
 0x18b   :  { %330 = vrcp.f32 %v178_v56  ;;  %v325_v57 = vpop.eup %324  ;;  %v205_v12 = vand.u32 2147483647, %v178_v56  ;;  %vm201_vm13 = vweird.f32 %v178_v56  ;;  %v207_v16 = vand.u32 2147483648, %v178_v56 }
 0x18c   :  { %v327_v58 = vpop.eup %326  ;;  %v444_v59 = vadd.f32 1.0, %v325_v57  ;;  %v223_v22 = vor.u32 1.1754944e-38, %v222_v9 }
 0x18d   :  { %v182_v60 = vmul.f32 %v327_v58, %v177_v52  ;;  %vm187_vm8 = vweird.f32 %v327_v58  ;;  %vm206_vm1 = vcmp.eq.f32.partialorder %v205_v12, 8.507059e+37  ;;  %v208_v27 = vor.u32 1.1754944e-38, %v207_v16 }
 0x18e   :  { %332 = vrcp.f32 %v444_v59  ;;  %v329_v63 = vpop.eup %328  ;;  %vm188_vm11 = vmor %vm186_vm6, %vm187_vm8  ;;  %v235_v28 = vand.u32 2147483647, %v444_v59  ;;  %v237_v29 = vand.u32 2147483648, %v444_v59  ;;  %vm231_vm4 = vweird.f32 %v444_v59 }
 0x18f   :  { %v183_v0 = vsub.f32 1.0, %v182_v60  ;;  %v212_v2 = vmul.f32 %v329_v63, %v179_v55  ;;  %vm217_vm12 = vweird.f32 %v329_v63 }
 0x190   :  { %vm218_vm0 = vmor %vm216_vm10, %vm217_vm12  ;;  %v238_v37 = vor.u32 1.1754944e-38, %v237_v29  ;;  %vm236_vm6 = vcmp.eq.f32.partialorder %v235_v28, 8.507059e+37 }
 0x191   :  { %v331_v1 = vpop.eup %330  ;;  %v184_v3 = vmul.f32 %v327_v58, %v183_v0  ;;  %v213_v7 = vsub.f32 1.0, %v212_v2 }
 0x192   :  { %v197_v5 = vmul.f32 %v331_v1, %v178_v56  ;;  %vm202_vm14 = vweird.f32 %v331_v1 }
 0x193   :  { %v185_v10 = vadd.f32 %v327_v58, %v184_v3  ;;  %v214_v14 = vmul.f32 %v329_v63, %v213_v7  ;;  %vm203_vm2 = vmor %vm201_vm13, %vm202_vm14 }
 0x194   :  { %v198_v11 = vsub.f32 1.0, %v197_v5  ;;  %v333_v13 = vpop.eup %332 }
 0x195   :  { %v189_v17 = vsel %vm188_vm11, %v327_v58, %v185_v10  ;;  %v227_v19 = vmul.f32 %v333_v13, %v444_v59  ;;  %v215_v21 = vadd.f32 %v329_v63, %v214_v14  ;;  %vm232_vm3 = vweird.f32 %v333_v13 }
 0x196   :  { %v199_v18 = vmul.f32 %v331_v1, %v198_v11  ;;  %v194_v20 = vsel %vm447_vm9, %v193_v6, %v189_v17  ;;  %vm233_vm5 = vmor %vm231_vm4, %vm232_vm3 }
 0x197   :  { %v245_v23 = vperm.slane %v194_v20, %v432_v15  ;;  %v228_v25 = vsub.f32 1.0, %v227_v19  ;;  %v219_v26 = vsel %vm218_vm0, %v329_v63, %v215_v21 }
 0x198   :  { %v200_v24 = vadd.f32 %v331_v1, %v199_v18  ;;  %v224_v30 = vsel %vm221_vm15, %v223_v22, %v219_v26 }
 0x199   :  { %v229_v32 = vmul.f32 %v333_v13, %v228_v25  ;;  %254 = vst.msk [vmem:[#allocation5] sm:$0x1] %vm253_vm7, %v245_v23  ;;  %v247_v33 = vperm.slane %v224_v30, %v432_v15 }
 0x19a   :  { %v204_v31 = vsel %vm203_vm2, %v331_v1, %v200_v24 }
 0x19b   :  { %v209_v34 = vsel %vm206_vm1, %v208_v27, %v204_v31  ;;  %v230_v36 = vadd.f32 %v333_v13, %v229_v32  ;;  %256 = vst.msk [vmem:[#allocation5 + $0x2] sm:$0x1] %vm253_vm7, %v247_v33 }
 0x19c   :  { %v246_v35 = vperm.slane %v209_v34, %v432_v15 }
 0x19d   :  { %v234_v38 = vsel %vm233_vm5, %v333_v13, %v230_v36 }
 0x19e   :  { %255 = vst.msk [vmem:[#allocation5 + $0x1] sm:$0x1] %vm253_vm7, %v246_v35  ;;  %v239_v39 = vsel %vm236_vm6, %v238_v37, %v234_v38 }
 0x19f   :  { %v248_v40 = vperm.slane %v239_v39, %v432_v15 }
 0x1a1   :  { %257 = vst.msk [vmem:[#allocation5 + $0x3] sm:$0x1] %vm253_vm7, %v248_v40 }
 0x1a2   :  { %270 = dma.vmem_to_hbm [thread:$0]  %s263_s1, 64, %s265_s30, [#allocation4], %s392_s4, %s392_s4, %s393_s5  }
 0x1a3   :  { %384 = dma.done.wait [#allocation4], 64  }
 0x1a4   :  { %385 = vsyncadd [#allocation4], 4294967232 }
 0x1a5   :  { %275 = vsyncpa [#allocation3], 1 }
 0x1a6   :  { %276 = vsyncpa [#allocation4], 1 }

</bundles_post_ra>
